<compile_context>
chip_gen: v7x
topology: tpu7x:2x2x1
jax: 0.10.0
libtpu: 0.0.40
codegen_flags: <defaults>
</compile_context>

<pallas_src>
import jax
import jax.numpy as jnp
from jax import lax
from jax.experimental import pallas as pl
from jax.experimental.pallas import tpu as pltpu


def _linear_kernel(x_ref, w_ref, b_ref, o_ref):
    # x_ref: (tm, dim)         input tile
    # w_ref: (out_dim, dim)    PyTorch nn.Linear layout (out, in), consumed as-is
    # b_ref: (1, out_dim)
    # o_ref: (tm, out_dim)
    acc = lax.dot_general(
        x_ref[...], w_ref[...],
        dimension_numbers=(((1,), (1,)), ((), ())),   # contract on `in` axis
        preferred_element_type=jnp.float32)
    acc = acc + b_ref[...].astype(jnp.float32)
    o_ref[...] = acc.astype(o_ref.dtype)


def _choose_tm(M, dim, out_dim, dtype_bytes, budget_bytes=12 * 1024 * 1024):
    """Largest power-of-two M-tile whose double-buffered footprint fits budget."""
    # Resident: weight + bias (budget 2x for safety) + double-buffered x / out tiles.
    fixed = 2 * (dim * out_dim + out_dim) * dtype_bytes
    tm = 1024
    while tm > 8:
        need = 2 * tm * (dim + out_dim) * dtype_bytes + fixed
        if need <= budget_bytes:
            break
        tm //= 2
    tm = max(8, tm)
    # Don't pick a tile bigger than the (8-aligned) problem itself.
    m_aligned = ((M + 7) // 8) * 8
    return min(tm, m_aligned)


def linear_upsample(x, weight, bias, shorten_factor):
    """Pallas implementation of LinearUpsample.forward.

    Args:
      x:      (b, n, dim)
      weight: (dim * shorten_factor, dim)   -- PyTorch nn.Linear layout (out, in)
      bias:   (dim * shorten_factor,)
    Returns:
      (b, n * shorten_factor, dim)
    """
    b, n, dim = x.shape
    out_dim = dim * shorten_factor
    assert weight.shape == (out_dim, dim)
    assert bias.shape == (out_dim,)

    M = b * n
    x2d = x.reshape(M, dim)
    b2d = bias.reshape(1, out_dim)

    dtype_bytes = jnp.dtype(x.dtype).itemsize
    tm = _choose_tm(M, dim, out_dim, dtype_bytes)

    # Pad M up to a multiple of the tile so the tail block is well-defined.
    n_tiles = pl.cdiv(M, tm)
    M_pad = n_tiles * tm
    if M_pad != M:
        x2d = jnp.pad(x2d, ((0, M_pad - M), (0, 0)))

    cost = pl.CostEstimate(
        flops=2 * M_pad * dim * out_dim,
        transcendentals=0,
        bytes_accessed=(M_pad * dim + dim * out_dim + out_dim
                        + M_pad * out_dim) * dtype_bytes,
    )

    y2d = pl.pallas_call(
        _linear_kernel,
        out_shape=jax.ShapeDtypeStruct((M_pad, out_dim), x.dtype),
        grid_spec=pltpu.PrefetchScalarGridSpec(
            num_scalar_prefetch=0,
            grid=(n_tiles,),
            in_specs=[
                pl.BlockSpec((tm, dim), lambda i: (i, 0)),        # x tile
                pl.BlockSpec((out_dim, dim), lambda i: (0, 0)),    # full weight
                pl.BlockSpec((1, out_dim), lambda i: (0, 0)),      # bias
            ],
            out_specs=pl.BlockSpec((tm, out_dim), lambda i: (i, 0)),
        ),
        compiler_params=pltpu.CompilerParams(
            dimension_semantics=("parallel",),          # independent M tiles -> megacore
            vmem_limit_bytes=32 * 1024 * 1024,
        ),
        cost_estimate=cost,
    )(x2d, weight, b2d)

    if M_pad != M:
        y2d = y2d[:M]

    # rearrange 'b n (s d) -> b (n s) d'  (pure reshape)
    return y2d.reshape(b, n * shorten_factor, dim)


if __name__ == "__main__":
    # Small deterministic setup.
    batch, seq, dim = 2, 8, 32
    shorten_factor = 2
    out_dim = dim * shorten_factor

    key = jax.random.PRNGKey(0)
    kx, kw, kb = jax.random.split(key, 3)

    x = jax.random.normal(kx, (batch, seq, dim), dtype=jnp.float32)
    # Deterministic "Linear" params (PyTorch-style uniform init bounds).
    bound = 1.0 / (dim ** 0.5)
    weight = jax.random.uniform(kw, (out_dim, dim), minval=-bound, maxval=bound,
                                dtype=jnp.float32)
    bias = jax.random.uniform(kb, (out_dim,), minval=-bound, maxval=bound,
                              dtype=jnp.float32)

    y = linear_upsample(x, weight, bias, shorten_factor)
    jax.block_until_ready(y)

    # Reference check against plain JAX.
    y_ref = (x.reshape(batch * seq, dim) @ weight.T + bias).reshape(
        batch, seq * shorten_factor, dim)
    assert y.shape == (batch, seq * shorten_factor, dim)
    assert jnp.allclose(y, y_ref, atol=1e-5, rtol=1e-5)

    print("KERNEL_OK")
</pallas_src>

<mosaic_0001>
module attributes {stable_mosaic.version = 11 : i64} {
  func.func @_linear_kernel(%arg0: i32, %arg1: memref<16x32xf32, #tpu.memory_space<vmem>>, %arg2: memref<64x32xf32, #tpu.memory_space<vmem>>, %arg3: memref<1x64xf32, #tpu.memory_space<vmem>>, %arg4: memref<16x64xf32, #tpu.memory_space<vmem>>) attributes {dimension_semantics = [#tpu.dimension_semantics<parallel>], iteration_bounds = array<i64: 1>, scalar_prefetch = 0 : i64, scratch_operands = 0 : i64, tpu.core_type = #tpu.core_type<tc>, window_params = [{transform_indices = @transform_0, window_bounds = array<i64: 16, 32>}, {pipeline_mode = #tpu.pipeline_mode<synchronous>, transform_indices = @transform_1, window_bounds = array<i64: 64, 32>}, {pipeline_mode = #tpu.pipeline_mode<synchronous>, transform_indices = @transform_2, window_bounds = array<i64: 1, 64>}, {transform_indices = @transform_3, window_bounds = array<i64: 16, 64>}]} {
    %c0 = arith.constant 0 : index
    %c0_0 = arith.constant 0 : index
    %0 = vector.load %arg1[%c0, %c0_0] : memref<16x32xf32, #tpu.memory_space<vmem>>, vector<16x32xf32>
    %c0_1 = arith.constant 0 : index
    %c0_2 = arith.constant 0 : index
    %1 = vector.load %arg2[%c0_1, %c0_2] : memref<64x32xf32, #tpu.memory_space<vmem>>, vector<64x32xf32>
    %cst = arith.constant dense<0.000000e+00> : vector<16x64xf32>
    %2 = tpu.matmul %0, %1, %cst {dimension_numbers = #tpu.dot_dimension_numbers<[1], [1], [0], [0], [0, 0, 1, 0], [], []>} : vector<16x32xf32>, vector<64x32xf32>, vector<16x64xf32> -> vector<16x64xf32>
    %c0_3 = arith.constant 0 : index
    %c0_4 = arith.constant 0 : index
    %3 = vector.load %arg3[%c0_3, %c0_4] : memref<1x64xf32, #tpu.memory_space<vmem>>, vector<1x64xf32>
    %4 = vector.broadcast %3 : vector<1x64xf32> to vector<16x64xf32>
    %5 = arith.addf %2, %4 : vector<16x64xf32>
    %c0_5 = arith.constant 0 : index
    %c0_6 = arith.constant 0 : index
    %6 = vector.load %arg4[%c0_5, %c0_6] : memref<16x64xf32, #tpu.memory_space<vmem>>, vector<16x64xf32>
    tpu.vector_store %arg4[%c0_5, %c0_6], %5 {strides = array<i32>} : memref<16x64xf32, #tpu.memory_space<vmem>>, vector<16x64xf32>,
    return
  }
  func.func @transform_0(%arg0: i32) -> (i32, i32) {
    %c0_i32 = arith.constant 0 : i32
    %c0_i32_0 = arith.constant 0 : i32
    return %arg0, %c0_i32 : i32, i32
  }
  func.func @transform_1(%arg0: i32) -> (i32, i32) {
    %c0_i32 = arith.constant 0 : i32
    %c0_i32_0 = arith.constant 0 : i32
    %c0_i32_1 = arith.constant 0 : i32
    return %c0_i32, %c0_i32_0 : i32, i32
  }
  func.func @transform_2(%arg0: i32) -> (i32, i32) {
    %c0_i32 = arith.constant 0 : i32
    %c0_i32_0 = arith.constant 0 : i32
    %c0_i32_1 = arith.constant 0 : i32
    return %c0_i32, %c0_i32_0 : i32, i32
  }
  func.func @transform_3(%arg0: i32) -> (i32, i32) {
    %c0_i32 = arith.constant 0 : i32
    %c0_i32_0 = arith.constant 0 : i32
    return %arg0, %c0_i32 : i32, i32
  }
}

</mosaic_0001>

<bundles_post_ra>
// kernel: tpu_custom_call.1
= control target key start
LH: loop header
LB: loop body
LE: loop exit
PB: predicated region body
PF: predicated region fallthrough
CT: control target
= control target key end

     0   :  { %vm32_vm0 = vcmask 261120   ;;  %s340_s0 = inlined_call_operand.vmem [shape: f32[16,32], index: 0, kind: input, shape index: {}]   ;;  %s341_s1 = inlined_call_operand.vmem [shape: f32[64,32], index: 1, kind: input, shape index: {}]   ;;  %s342_s2 = inlined_call_operand.vmem [shape: f32[1,64], index: 2, kind: input, shape index: {}]   ;;  %s343_s3 = inlined_call_operand.hbm [shape: f32[16,64], index: 3, kind: output, shape index: {}]  }
   0x1   :  { %v17_v0 = vld [vmem:[%s341_s1] sm:$0xff]  ;;  %v18_v1 = vld [vmem:[%s341_s1 + $0x8] sm:$0xff]  ;;  %v19_v2 = vld [vmem:[%s341_s1 + $0x10] sm:$0xff] }
   0x2   :  { %v197_v3 = vpack.c.bf16 %v18_v1, %v17_v0  ;;  %vm282_vm1 = vmpackc.low %vm32_vm0, %vm32_vm0  ;;  %v20_v5 = vld [vmem:[%s341_s1 + $0x18] sm:$0xff]  ;;  %v15_v7 = vld [vmem:[%s340_s0] sm:$0xff] }
   0x3   :  { %v203_v6 = vpack.c.bf16 %v20_v5, %v19_v2 }
   0x4   :  { %199 = vmatprep.subr.msk.bf16.mxu0 %vm282_vm1, %v197_v3 }
   0x5   :  { %8 = vsyncpa [#allocation3], 0  ;;  %202 = vmatpush3.bf16.xpose.msk.msra.mxu0 %vm282_vm1, %v197_v3  ;;  %194 = vmatprep.mubr.msk.f32.mxu0 %vm32_vm0, %v15_v7  ;;  %v21_v8 = vld [vmem:[%s341_s1 + $0x20] sm:$0xff]  ;;  %v22_v9 = vld [vmem:[%s341_s1 + $0x28] sm:$0xff]  ;;  %vm138_vm2 = vcmask 523264  }
   0x6   :  { %205 = vmatprep.subr.msk.bf16.mxu0 %vm282_vm1, %v203_v6  ;;  %v209_v10 = vpack.c.bf16 %v22_v9, %v21_v8  ;;  %v23_v11 = vld [vmem:[%s341_s1 + $0x30] sm:$0xff]  ;;  %v24_v12 = vld [vmem:[%s341_s1 + $0x38] sm:$0xff]  ;;  %v16_v14 = vld [vmem:[%s340_s0 + $0x8] sm:$0xff]  ;;  %s248_s1 = smov [#allocation2]  }
   0x7   :  { %v215_v13 = vpack.c.bf16 %v24_v12, %v23_v11  ;;  %v157_v15 = vld [vmem:[%s342_s2] ss:$0 sm:$0xff]  ;;  %s146_s7 = sshll.u32 %s248_s1, 4  ;;  %s147_s7 = int_to_ptr.vmem [resolvable:$true] %s146_s7 }
   0x8   :  { %s224_s8 = scalar_lea.vmem %s147_s7, 256  ;;  %p229_p1 = scmp.lt.s32.totalorder %s147_s7, %s147_s7 }
   0x9   :  { %p225_p0 = scmp.ne.s32.totalorder %s147_s7, %s224_s8  ;;  %p230_p2 = scmp.lt.s32.totalorder %s224_s8, %s224_s8 }
   0xb   :  { %p231_p3 = por %p230_p2, %p229_p1 }
   0xd   :  { %208 = vmatpush3.bf16.xpose.msk.msra.mxu0 %vm282_vm1, %v203_v6  ;;  %p232_p4 = pnand %p231_p3, %p225_p0 }
   0xe   :  { %211 = vmatprep.subr.msk.bf16.mxu0 %vm282_vm1, %v209_v10 }
  0x15   :  { %214 = vmatpush3.bf16.xpose.msk.msra.mxu0 %vm282_vm1, %v209_v10 }
  0x16   :  { %217 = vmatprep.subr.msk.bf16.mxu0 %vm282_vm1, %v215_v13 }
  0x1d   :  { %220 = vmatpush3.bf16.xpose.msk.msra.mxu0 %vm282_vm1, %v215_v13 }
  0x24   :  { %195 = vmatmul.mubr.msk.f32.vlgmr.msra.gmra.mrb[0].mxu0 %vm32_vm0, %v16_v14 }
  0xf7   :  { %v196_v16 = vpop.f32.mrb[0].mxu0 }
  0xf8   :  { %v135_v17 = vadd.f32 %v196_v16, %v157_v15  ;;  %v129_v18 = vpop.f32.mrb[1].mxu0 }
  0xf9   :  { %v130_v19 = vadd.f32 %v157_v15, %v129_v18 }
  0xfa   :  { %140 = vst.msk [vmem:[#allocation2 + $0x8] sm:$0xff] %vm138_vm2, %v135_v17 }
  0xfb   :  { %139 = vst.msk [vmem:[#allocation2] sm:$0xff] %vm138_vm2, %v130_v19 }
  0xfc   :  { %235 = shalt.err (!%p232_p4)
}
  0xfd   :  { %s236_s2 = scalar_lea.hbm %s343_s3, 256 }
  0xfe   :  { %p237_p5 = scmp.ne.s32.totalorder %s343_s3, %s236_s2  ;;  %p240_p6 = scmp.lt.u32.totalorder %s236_s2, %s343_s3 }
 0x100   :  { %p242_p7 = pnand %p240_p6, %p237_p5 }
 0x102   :  { %245 = shalt.err (!%p242_p7)
}
 0x103   :  { %s249_s14 = smov 128   ;;  %s250_s15 = smov 8  }
 0x104   :  { %152 = dma.vmem_to_hbm [thread:$0]  %s147_s7, 256, %s343_s3, [#allocation3], %s249_s14, %s249_s14, %s250_s15  }
 0x105   :  { %246 = dma.done.wait [#allocation3], 256  }
 0x106   :  { %247 = vsyncadd [#allocation3], 4294967040 }
 0x107   :  { %156 = vsyncpa [#allocation3], 1 }

</bundles_post_ra>
